<compile_context>
chip_gen: v6e
topology: v6e:2x2x1
jax: 0.10.0
libtpu: 0.0.40
codegen_flags: <defaults>
</compile_context>

<pallas_src>
from functools import partial

import jax
import jax.numpy as jnp
from jax.experimental import pallas as pl
from jax.experimental.pallas import tpu as pltpu


# --------------------------------------------------------------------------
# Kernel
# --------------------------------------------------------------------------
def _layernorm_kernel(x_ref, alpha_ref, bias_ref, o_ref, *, eps, feat,
                      approx_recip):
    # x_ref: (tm, D), alpha_ref / bias_ref: (1, D), o_ref: (tm, D)
    x = x_ref[...].astype(jnp.float32)

    # One-pass stats: both cross-lane reductions pipeline on the XLU.
    s = jnp.sum(x, axis=-1, keepdims=True)
    sq = jnp.sum(x * x, axis=-1, keepdims=True)
    mean = s * (1.0 / feat)
    # torch.std(dim=-1) is the unbiased estimator (divides by N-1).
    # Clamp tiny negatives from cancellation before the sqrt.
    var = jnp.maximum(sq - s * mean, 0.0) * (1.0 / max(feat - 1, 1))
    std = jnp.sqrt(var)

    # Per-row divide on the (otherwise idle) EUP slot.
    inv = pl.reciprocal(std + eps, approx=approx_recip)

    y = (alpha_ref[...].astype(jnp.float32) * (x - mean) * inv
         + bias_ref[...].astype(jnp.float32))
    o_ref[...] = y.astype(o_ref.dtype)


# --------------------------------------------------------------------------
# Wrapper
# --------------------------------------------------------------------------
def _round_up(n, m):
    return ((n + m - 1) // m) * m


def _derive_row_tile(M, D, itemsize):
    """Pick the row tile + vmem limit from the chip's VMEM capacity."""
    try:
        vmem_cap = int(pltpu.get_tpu_info().vmem_capacity_bytes)
    except Exception:  # conservative fallback (v7x per-TC capacity)
        vmem_cap = 64 * 1024 * 1024

    # Double-buffered input + output tiles => ~4 * tm * D * itemsize live bytes.
    # v7x (64 MiB VMEM) -> ~21 MiB budget; v5e/v6e (128 MiB) -> ~43 MiB budget.
    budget = min(vmem_cap // 3, 48 * 1024 * 1024)
    tm = budget // (4 * D * itemsize)
    tm = max(8, min(1024, (tm // 8) * 8))

    # v7x dual-TensorCore balance: >= 2 grid steps whenever M allows it.
    if M > 8:
        tm = min(tm, max(8, _round_up((M + 1) // 2, 8)))
    # Never bigger than one (8-aligned) pass over all rows.
    tm = min(tm, max(8, _round_up(M, 8)))

    needed = 4 * tm * D * itemsize + 4 * D * itemsize
    vmem_limit = int(min(vmem_cap, max(needed + (4 << 20), 32 << 20)))
    return tm, vmem_limit


def layer_norm(x, alpha, bias, *, eps=1e-6, approx_recip=True):
    """LayerNormalization over the last axis. x: (..., D); alpha, bias: (D,)."""
    orig_shape = x.shape
    D = orig_shape[-1]
    M = 1
    for s in orig_shape[:-1]:
        M *= s

    x2 = x.reshape(M, D)
    a2 = alpha.reshape(1, D)
    b2 = bias.reshape(1, D)

    itemsize = jnp.dtype(x.dtype).itemsize
    tm, vmem_limit = _derive_row_tile(M, D, itemsize)

    out = pl.pallas_call(
        partial(_layernorm_kernel, eps=eps, feat=D, approx_recip=approx_recip),
        out_shape=jax.ShapeDtypeStruct((M, D), x.dtype),
        grid_spec=pltpu.PrefetchScalarGridSpec(
            num_scalar_prefetch=0,
            # No padding: the ragged last block's OOB reads only affect rows
            # whose writes are dropped (stats are purely row-local).
            grid=(pl.cdiv(M, tm),),
            in_specs=[
                pl.BlockSpec((tm, D), lambda i: (i, 0)),   # x row tile
                pl.BlockSpec((1, D), lambda i: (0, 0)),    # alpha (constant)
                pl.BlockSpec((1, D), lambda i: (0, 0)),    # bias  (constant)
            ],
            out_specs=pl.BlockSpec((tm, D), lambda i: (i, 0)),
        ),
        compiler_params=pltpu.CompilerParams(
            dimension_semantics=("parallel",),   # row axis shards across TCs
            vmem_limit_bytes=vmem_limit,         # keep full double-buffering
        ),
        # Output reuses the activation's HBM buffer (same shape/dtype, x dead).
        input_output_aliases={0: 0},
    )(x2, a2, b2)

    return out.reshape(orig_shape)


def decoder_forward(x, encoder_output, src_mask, tgt_mask, layers, alpha, bias,
                    *, eps=1e-6, approx_recip=True):
    """Decoder.forward: run each layer, then the Pallas LayerNormalization."""
    # TODO(synk): DecoderBlock internals are opaque in the spec (nn.ModuleList
    # contents undefined), so layers stay plain-JAX callables and the final LN
    # cannot be fused into the last layer's epilogue (which would save one full
    # activation HBM round trip); only the norm itself is a Pallas kernel.
    for layer in layers:
        x = layer(x, encoder_output, src_mask, tgt_mask)
    return layer_norm(x, alpha, bias, eps=eps, approx_recip=approx_recip)


# --------------------------------------------------------------------------
# Demo / correctness check
# --------------------------------------------------------------------------
if __name__ == "__main__":
    key = jax.random.PRNGKey(0)
    kx, ke = jax.random.split(key)

    # Lane-dense feature dim (multiple of 128) so output stores are full vst.
    batch, seq, d_model = 2, 8, 128
    eps = 1e-6

    x = jax.random.normal(kx, (batch, seq, d_model), jnp.float32)
    encoder_output = jax.random.normal(ke, (batch, seq, d_model), jnp.float32)
    src_mask = jnp.ones((batch, 1, 1, seq), jnp.float32)
    tgt_mask = jnp.ones((batch, 1, seq, seq), jnp.float32)

    # Placeholder decoder layers (plain JAX) to exercise the Decoder loop.
    def make_layer(scale):
        def layer(h, enc_out, sm, tmask):
            return h + scale * jnp.tanh(enc_out)
        return layer
    layers = [make_layer(0.1), make_layer(0.2)]

    # LayerNormalization parameters (PyTorch init: ones / zeros).
    alpha = jnp.ones((d_model,), jnp.float32)
    bias = jnp.zeros((d_model,), jnp.float32)

    fwd_fast = jax.jit(partial(decoder_forward, layers=layers, eps=eps,
                               approx_recip=True))
    fwd_exact = jax.jit(partial(decoder_forward, layers=layers, eps=eps,
                                approx_recip=False))

    out_fast = jax.block_until_ready(
        fwd_fast(x, encoder_output, src_mask, tgt_mask, alpha=alpha, bias=bias))
    out_exact = jax.block_until_ready(
        fwd_exact(x, encoder_output, src_mask, tgt_mask, alpha=alpha, bias=bias))

    # Pure-JAX reference (torch-style unbiased std, /(std+eps)).
    h = x
    for layer in layers:
        h = layer(h, encoder_output, src_mask, tgt_mask)
    mean = h.mean(axis=-1, keepdims=True)
    var = ((h - mean) ** 2).sum(axis=-1, keepdims=True) / (d_model - 1)
    ref = alpha * (h - mean) / (jnp.sqrt(var) + eps) + bias

    assert out_exact.shape == (batch, seq, d_model)
    assert out_fast.shape == (batch, seq, d_model)
    # Exact-reciprocal path: tight check of the kernel math.
    assert jnp.allclose(out_exact, ref, atol=1e-5, rtol=1e-5)
    # approx=True reciprocal has ~2^-12 relative error on 1/(std+eps).
    assert jnp.allclose(out_fast, ref, atol=3e-3, rtol=3e-3)

    print("KERNEL_OK")
</pallas_src>

<mosaic_0001>
module attributes {stable_mosaic.version = 11 : i64} {
  func.func @_layernorm_kernel(%arg0: i32, %arg1: memref<8x128xf32, #tpu.memory_space<vmem>>, %arg2: memref<1x128xf32, #tpu.memory_space<vmem>>, %arg3: memref<1x128xf32, #tpu.memory_space<vmem>>, %arg4: memref<8x128xf32, #tpu.memory_space<vmem>>) attributes {dimension_semantics = [#tpu.dimension_semantics<parallel>], iteration_bounds = array<i64: 2>, scalar_prefetch = 0 : i64, scratch_operands = 0 : i64, tpu.core_type = #tpu.core_type<tc>, window_params = [{transform_indices = @transform_0, window_bounds = array<i64: 8, 128>}, {pipeline_mode = #tpu.pipeline_mode<synchronous>, transform_indices = @transform_1, window_bounds = array<i64: 1, 128>}, {pipeline_mode = #tpu.pipeline_mode<synchronous>, transform_indices = @transform_2, window_bounds = array<i64: 1, 128>}, {transform_indices = @transform_3, window_bounds = array<i64: 8, 128>}]} {
    %c0 = arith.constant 0 : index
    %c0_0 = arith.constant 0 : index
    %0 = vector.load %arg1[%c0, %c0_0] : memref<8x128xf32, #tpu.memory_space<vmem>>, vector<8x128xf32>
    %cst = arith.constant dense<0.000000e+00> : vector<8xf32>
    %1 = vector.multi_reduction <add>, %0, %cst [1] : vector<8x128xf32> to vector<8xf32>
    %2 = vector.shape_cast %1 : vector<8xf32> to vector<8x1xf32>
    %3 = arith.mulf %0, %0 : vector<8x128xf32>
    %cst_1 = arith.constant dense<0.000000e+00> : vector<8xf32>
    %4 = vector.multi_reduction <add>, %3, %cst_1 [1] : vector<8x128xf32> to vector<8xf32>
    %5 = vector.shape_cast %4 : vector<8xf32> to vector<8x1xf32>
    %cst_2 = arith.constant 7.812500e-03 : f32
    %6 = vector.broadcast %cst_2 : f32 to vector<8x1xf32>
    %7 = arith.mulf %2, %6 : vector<8x1xf32>
    %8 = arith.mulf %2, %7 : vector<8x1xf32>
    %9 = arith.subf %5, %8 : vector<8x1xf32>
    %cst_3 = arith.constant 0.000000e+00 : f32
    %10 = vector.broadcast %cst_3 : f32 to vector<8x1xf32>
    %11 = arith.maximumf %9, %10 : vector<8x1xf32>
    %cst_4 = arith.constant 0.00787401571 : f32
    %12 = vector.broadcast %cst_4 : f32 to vector<8x1xf32>
    %13 = arith.mulf %11, %12 : vector<8x1xf32>
    %14 = math.sqrt %13 : vector<8x1xf32>
    %cst_5 = arith.constant 9.99999997E-7 : f32
    %15 = vector.broadcast %cst_5 : f32 to vector<8x1xf32>
    %16 = arith.addf %14, %15 : vector<8x1xf32>
    %17 = tpu.reciprocal %16 {approx = true} : vector<8x1xf32> -> vector<8x1xf32>
    %c0_6 = arith.constant 0 : index
    %c0_7 = arith.constant 0 : index
    %18 = vector.load %arg2[%c0_6, %c0_7] : memref<1x128xf32, #tpu.memory_space<vmem>>, vector<1x128xf32>
    %19 = vector.broadcast %7 : vector<8x1xf32> to vector<8x128xf32>
    %20 = arith.subf %0, %19 : vector<8x128xf32>
    %21 = vector.broadcast %18 : vector<1x128xf32> to vector<8x128xf32>
    %22 = arith.mulf %21, %20 : vector<8x128xf32>
    %23 = vector.broadcast %17 : vector<8x1xf32> to vector<8x128xf32>
    %24 = arith.mulf %22, %23 : vector<8x128xf32>
    %c0_8 = arith.constant 0 : index
    %c0_9 = arith.constant 0 : index
    %25 = vector.load %arg3[%c0_8, %c0_9] : memref<1x128xf32, #tpu.memory_space<vmem>>, vector<1x128xf32>
    %26 = vector.broadcast %25 : vector<1x128xf32> to vector<8x128xf32>
    %27 = arith.addf %24, %26 : vector<8x128xf32>
    %c0_10 = arith.constant 0 : index
    %c0_11 = arith.constant 0 : index
    %28 = vector.load %arg4[%c0_10, %c0_11] : memref<8x128xf32, #tpu.memory_space<vmem>>, vector<8x128xf32>
    tpu.vector_store %arg4[%c0_10, %c0_11], %27 {strides = array<i32>} : memref<8x128xf32, #tpu.memory_space<vmem>>, vector<8x128xf32>,
    return
  }
  func.func @transform_0(%arg0: i32) -> (i32, i32) {
    %c0_i32 = arith.constant 0 : i32
    %c0_i32_0 = arith.constant 0 : i32
    return %arg0, %c0_i32 : i32, i32
  }
  func.func @transform_1(%arg0: i32) -> (i32, i32) {
    %c0_i32 = arith.constant 0 : i32
    %c0_i32_0 = arith.constant 0 : i32
    %c0_i32_1 = arith.constant 0 : i32
    return %c0_i32, %c0_i32_0 : i32, i32
  }
  func.func @transform_2(%arg0: i32) -> (i32, i32) {
    %c0_i32 = arith.constant 0 : i32
    %c0_i32_0 = arith.constant 0 : i32
    %c0_i32_1 = arith.constant 0 : i32
    return %c0_i32, %c0_i32_0 : i32, i32
  }
  func.func @transform_3(%arg0: i32) -> (i32, i32) {
    %c0_i32 = arith.constant 0 : i32
    %c0_i32_0 = arith.constant 0 : i32
    return %arg0, %c0_i32 : i32, i32
  }
}

</mosaic_0001>

<bundles_post_ra>
// kernel: decoder_forward.1
= control target key start
LH: loop header
LB: loop body
LE: loop exit
PB: predicated region body
PF: predicated region fallthrough
CT: control target
= control target key end

     0   :  { %s309_s12 = smov 0   ;;  %s339_s0 = inlined_call_operand.vmem [shape: f32[16,128], index: 0, kind: input, shape index: {}, may-alias: {0,3}]   ;;  %s340_s1 = inlined_call_operand.vmem [shape: f32[1,128], index: 1, kind: input, shape index: {}]   ;;  %s341_s2 = inlined_call_operand.vmem [shape: f32[1,128], index: 2, kind: input, shape index: {}]   ;;  %s342_s3 = inlined_call_operand.vmem [shape: f32[16,128], index: 3, kind: output, shape index: {}, may-alias: {0,3}]  }
   0x1 LB: > { %s258_s13 = sadd.s32 4294967295, %s287_s12   ;;  %p262_p0 = scmp.ge.s32.totalorder %s287_s12, 1  ;;  %s287_s12 = sphi %s309_s12, %s13_s12  }
   0x2   : > { %p136_p1 = scmp.lt.s32.totalorder %s287_s12, 3 }
   0x4   : > { %p137_p2 = pnand %p262_p0, %p136_p1 }
   0x5   : > { %p158_p3 = scmp.lt.s32.totalorder (!%p137_p2), %s258_s13, 1 }
   0x6   : > { %140 = sbr.rel (%p137_p2) target bundleno = 202 (0xca), region = 32 }
   0xb   : > { %s344_s13 = smov (!%p158_p3, %s258_s13), 1  ;;  %v265_v16 = vld [vmem:[%s340_s1] ss:$0 sm:$0xff] }
   0xc   : > { %s263_s14 = sshll.u32 %s344_s13, 3  ;;  %v266_v19 = vld [vmem:[%s341_s2] ss:$0 sm:$0xff] }
   0xd   : > { %s161_s17 = scalar_lea.vmem %s339_s0, %s263_s14  ;;  %s165_s24 = scalar_lea.vmem %s342_s3, %s263_s14 }
   0xe   : > { %v166_v0 = vld [vmem:[%s161_s17] sm:$0xff] }
   0xf   : > { %167 = vadd.xlane.f32.xlu0 %v166_v0  ;;  %v169_v1 = vmul.f32 %v166_v0, %v166_v0 }
  0x13   : > { %170 = vadd.xlane.f32.xlu0 %v169_v1 }
  0x98   : > { %v168_v2 = vpop.xlane.xlu0 %167 }
  0x99   : > { %v172_v3 = vmul.f32 0.0078125, %v168_v2 }
  0x9b   : > { %v173_v4 = vmul.f32 %v172_v3, %v168_v2  ;;  %v187_v15 = vsub.f32 %v166_v0, %v172_v3 }
  0x9c   : > { %v171_v5 = vpop.xlane.xlu0 %170 }
  0x9d   : > { %v174_v6 = vsub.f32 %v171_v5, %v173_v4  ;;  %v194_v17 = vmul.f32 %v265_v16, %v187_v15 }
  0x9f   : > { %v175_v7 = vmax.f32 %v174_v6, 0.0 }
  0xa1   : > { %v176_v8 = vmul.f32 0.007874016, %v175_v7 }
  0xa3   : > { %277 = vrsqrt.f32 %v176_v8  ;;  %vm179_vm0 = vcmp.eq.f32.partialorder %v176_v8, inf  ;;  %v182_v11 = vand.u32 2147483648, %v176_v8  ;;  %vm181_vm1 = vcmp.eq.f32.partialorder %v176_v8, 0.0 }
  0xb0   : > { %v278_v9 = vpop.eup %277 }
  0xb1   : > { %v178_v10 = vmul.f32 %v278_v9, %v176_v8 }
  0xb3   : > { %v180_v12 = vsel %vm179_vm0, %v176_v8, %v178_v10 }
  0xb4   : > { %v183_v13 = vsel %vm181_vm1, %v182_v11, %v180_v12 }
  0xb5   : > { %v184_v14 = vadd.f32 1e-06, %v183_v13 }
  0xb7   : > { %279 = vrcp.f32 %v184_v14 }
  0xc4   : > { %v280_v18 = vpop.eup %279 }
  0xc5   : > { %v195_v20 = vmul.f32 %v280_v18, %v194_v17 }
  0xc7   : > { %v203_v21 = vadd.f32 %v266_v19, %v195_v20 }
  0xc9   : > { %204 = vst [vmem:[%s165_s24] sm:$0xff] %v203_v21 }
  0xca PF: > { %s13_s12 = sadd.s32 1, %s287_s12  }
  0xcb   : > { %p10_p4 = scmp.ge.s32.totalorder %s13_s12, 4  }
  0xcd   :  { %12 = sbr.rel (!%p10_p4) target bundleno = 1 (0x1), region = 62 }

</bundles_post_ra>
